<compile_context>
chip_gen: v7x
topology: tpu7x:2x2x1
jax: 0.10.0
libtpu: 0.0.40
codegen_flags: <defaults>
</compile_context>

<pallas_src>
import functools

import jax
import jax.numpy as jnp
from jax.experimental import pallas as pl
from jax.experimental.pallas import tpu as pltpu

N_CH = 14


def _is_v7x():
    try:
        kind = jax.devices()[0].device_kind.lower()
    except Exception:  # pragma: no cover - defensive
        return False
    return ("v7" in kind) or ("7x" in kind)


# ----------------------------------------------------------------------------
# Pallas kernel: per-tile loss terms accumulated into VMEM scratch, final
# XLU reduction to per-core scalars on the last reduction step.
# ----------------------------------------------------------------------------
def _loss_kernel(x_ref, sdf_out, norm_out, morph_out,
                 sdf_acc, norm_acc, morph_acc, *, t1, t2, scale, red_axis):
    i = pl.program_id(red_axis)
    last = pl.num_programs(red_axis) - 1

    @pl.when(i == 0)
    def _init():
        sdf_acc[...] = jnp.zeros_like(sdf_acc)
        norm_acc[...] = jnp.zeros_like(norm_acc)
        morph_acc[...] = jnp.zeros_like(morph_acc)

    # --- channels needed by morph + sdf first (retire them before touching
    # the six normal channels: keeps live ranges / vreg pressure low) -------
    g0 = x_ref[0, 0]
    g1 = x_ref[1, 0]
    g2 = x_ref[2, 0]
    ft = x_ref[3, 0]
    pred = x_ref[4, 0]
    tcrd = x_ref[5, 0]
    m1 = x_ref[6, 0]
    m2 = x_ref[7, 0]

    # time-plane masks computed once, reused for sdf and normal constraints
    mask1 = tcrd == t1
    mask2 = tcrd == t2

    gsq = g0 * g0 + g1 * g1 + g2 * g2
    gnorm = jnp.sqrt(gsq)

    # morphing_to_NI(grad, pred, coords, sdf_target=model2_out, scale=0.5)
    diff2 = m2 - pred
    target_def = diff2 * jnp.exp(-(pred * pred))
    morph_c = (ft + (-scale * target_def) * gnorm) ** 2
    morph_acc[...] += morph_c

    # sdf constraint on the two time planes (exact float match, as in torch)
    diff1 = m1 - pred
    sdf_c = jnp.where(mask1, diff1 * diff1, 0.0)
    sdf_c = jnp.where(mask2, diff2 * diff2, sdf_c)
    sdf_acc[...] += sdf_c

    # --- normal constraint: 1 - cosine_similarity (eps = 1e-8) -------------
    n1x = x_ref[8, 0]
    n1y = x_ref[9, 0]
    n1z = x_ref[10, 0]
    n2x = x_ref[11, 0]
    n2y = x_ref[12, 0]
    n2z = x_ref[13, 0]

    #   cos = dot * rsqrt(max(|g|^2, eps^2) * max(|n|^2, eps^2))
    eps2 = 1e-16
    gsq_c = jnp.maximum(gsq, eps2)
    n1sq = n1x * n1x + n1y * n1y + n1z * n1z
    n2sq = n2x * n2x + n2y * n2y + n2z * n2z
    dot1 = g0 * n1x + g1 * n1y + g2 * n1z
    dot2 = g0 * n2x + g1 * n2y + g2 * n2z
    cos1 = dot1 * jax.lax.rsqrt(gsq_c * jnp.maximum(n1sq, eps2))
    cos2 = dot2 * jax.lax.rsqrt(gsq_c * jnp.maximum(n2sq, eps2))
    norm_c = jnp.where(mask1, 1.0 - cos1, 0.0)
    norm_c = jnp.where(mask2, 1.0 - cos2, norm_c)
    norm_acc[...] += norm_c

    # --- final in-kernel reduction: one small splat write per core ---------
    @pl.when(i == last)
    def _finish():
        sdf_out[...] = jnp.full(sdf_out.shape, jnp.sum(sdf_acc[...]), jnp.float32)
        norm_out[...] = jnp.full(norm_out.shape, jnp.sum(norm_acc[...]), jnp.float32)
        morph_out[...] = jnp.full(morph_out.shape, jnp.sum(morph_acc[...]), jnp.float32)


def loss_morphing_pallas(packed, *, t1, t2, scale=0.5, tile=131072,
                         num_cores=None):
    """packed: channel-major (14, N) f32; N must be a multiple of `tile`
    (after clamping tile to N) and `tile` a multiple of 8*128."""
    c, n_pts = packed.shape
    assert c == N_CH
    tile = min(tile, n_pts)
    assert tile % (8 * 128) == 0, "tile must be a multiple of 8*128"
    assert n_pts % tile == 0, "N must be a multiple of the tile size"
    n_tiles = n_pts // tile
    t8 = tile // 8

    v7x = _is_v7x()
    if num_cores is None:
        # Only v7x has 2 TensorCores per chip; on v5e/v6e a core axis is pure
        # overhead so keep a single-axis grid there.
        num_cores = 2 if v7x else 1
    if num_cores > 1 and n_tiles % num_cores != 0:
        # TODO(synk): pad n_tiles to a multiple of the core count instead of
        # silently dropping to one core (halves v7x throughput for odd tiles).
        num_cores = 1

    # zero-copy repack: points fill both sublanes (8) and lanes (tile//8)
    x4 = packed.reshape(N_CH, n_tiles, 8, t8)

    # VMEM budget: double-buffered input block + 3 scratch accumulators.
    vmem_need = (2 * N_CH * tile + 3 * tile) * 4 + (1 << 20)
    vmem_ceiling = (48 << 20) if v7x else (96 << 20)
    vmem_limit = min(vmem_ceiling, max(32 << 20, int(vmem_need * 5 // 4)))

    def run(n_cores):
        tiles_per_core = n_tiles // n_cores
        if n_cores > 1:
            grid = (n_cores, tiles_per_core)
            dim_sem = (pltpu.CORE_PARALLEL, pltpu.ARBITRARY)
            in_map = lambda cc, i: (0, cc * tiles_per_core + i, 0, 0)
            out_map = lambda cc, i: (cc, 0, 0)
            red_axis = 1
        else:
            grid = (n_tiles,)
            dim_sem = (pltpu.ARBITRARY,)
            in_map = lambda i: (0, i, 0, 0)
            out_map = lambda i: (0, 0, 0)
            red_axis = 0

        kernel = functools.partial(
            _loss_kernel, t1=float(t1), t2=float(t2), scale=float(scale),
            red_axis=red_axis)

        out_shape = tuple(
            jax.ShapeDtypeStruct((n_cores, 8, 128), jnp.float32)
            for _ in range(3))
        out_specs = tuple(pl.BlockSpec((1, 8, 128), out_map) for _ in range(3))

        return pl.pallas_call(
            kernel,
            out_shape=out_shape,
            grid=grid,
            in_specs=[pl.BlockSpec((N_CH, 1, 8, t8), in_map)],
            out_specs=out_specs,
            scratch_shapes=[pltpu.VMEM((8, t8), jnp.float32)] * 3,
            compiler_params=pltpu.CompilerParams(
                dimension_semantics=dim_sem,
                vmem_limit_bytes=vmem_limit),
        )(x4)

    if num_cores > 1:
        try:
            sdf_p, norm_p, morph_p = run(num_cores)
        except Exception:
            # Safe fallback if the core-parallel split is rejected on this
            # generation/runtime: single-axis grid (still fully pipelined).
            sdf_p, norm_p, morph_p = run(1)
    else:
        sdf_p, norm_p, morph_p = run(1)

    inv_n = 1.0 / jnp.float32(n_pts)
    return {
        "sdf_constraint": jnp.sum(sdf_p[:, 0, 0]) * inv_n * 10000.0,
        "normal_constraint": jnp.sum(norm_p[:, 0, 0]) * inv_n * 10.0,
        "morphing_constraint": jnp.sum(morph_p[:, 0, 0]) * inv_n * 10.0,
    }


# ----------------------------------------------------------------------------
# Synthetic SDF networks (deterministic params) + autodiff glue in plain JAX.
# TODO(synk): gradient(pred_sdf, coords) and the trained model1/model2 forward
# passes + their gradients are autograd over arbitrary network graphs; there is
# no Pallas equivalent, so they are produced with jax.vmap(jax.value_and_grad)
# over small deterministic SIREN-style MLPs outside the kernel.
# ----------------------------------------------------------------------------
def init_mlp(key, in_dim, hidden=32):
    k1, k2, k3 = jax.random.split(key, 3)
    w1 = jax.random.normal(k1, (in_dim, hidden), jnp.float32) * 0.5
    b1 = jnp.zeros((hidden,), jnp.float32)
    w2 = jax.random.normal(k2, (hidden, hidden), jnp.float32) / jnp.sqrt(hidden)
    b2 = jnp.zeros((hidden,), jnp.float32)
    w3 = jax.random.normal(k3, (hidden, 1), jnp.float32) / jnp.sqrt(hidden)
    b3 = jnp.zeros((1,), jnp.float32)
    return (w1, b1, w2, b2, w3, b3)


def mlp_sdf(params, x):
    w1, b1, w2, b2, w3, b3 = params
    h = jnp.sin(x @ w1 + b1)
    h = jnp.sin(h @ w2 + b2)
    return (h @ w3 + b3)[0]


def loss_reference(grad_flat, pred_flat, time_flat, m1_flat, m2_flat,
                   g1_flat, g2_flat, t1, t2, scale):
    """Pure-JAX reference mirroring the PyTorch loss_nise_interpolation."""
    g = grad_flat[:, :3]
    ft = grad_flat[:, 3]
    gnorm = jnp.sqrt(jnp.sum(g * g, axis=-1))
    target_def = (m2_flat - pred_flat) * jnp.exp(-pred_flat ** 2)
    morph = (ft + (-scale * target_def) * gnorm) ** 2

    sdf_c = jnp.where(time_flat == t1, (m1_flat - pred_flat) ** 2, 0.0)
    sdf_c = jnp.where(time_flat == t2, (m2_flat - pred_flat) ** 2, sdf_c)

    eps = 1e-8

    def cos_sim(a, b):
        na = jnp.maximum(jnp.sqrt(jnp.sum(a * a, -1)), eps)
        nb = jnp.maximum(jnp.sqrt(jnp.sum(b * b, -1)), eps)
        return jnp.sum(a * b, -1) / (na * nb)

    norm_c = jnp.where(time_flat == t1, 1.0 - cos_sim(g, g1_flat), 0.0)
    norm_c = jnp.where(time_flat == t2, 1.0 - cos_sim(g, g2_flat), norm_c)

    return {
        "sdf_constraint": sdf_c.mean() * 10000.0,
        "normal_constraint": norm_c.mean() * 10.0,
        "morphing_constraint": morph.mean() * 10.0,
    }


if __name__ == "__main__":
    B, NPTS, HIDDEN = 2, 2048, 32
    T1, T2, SCALE = -1.0, 1.0, 0.5   # times=(t1, t2); morphing scale=0.5

    key = jax.random.PRNGKey(0)
    kxyz, kcat, kmid, k_main, k_m1, k_m2 = jax.random.split(key, 6)

    xyz = jax.random.uniform(kxyz, (B, NPTS, 3), jnp.float32, -1.0, 1.0)
    # time samples: ~40% exactly t1, ~40% exactly t2, ~20% strictly in between
    cat = jax.random.randint(kcat, (B, NPTS, 1), 0, 5)
    mid = jax.random.uniform(kmid, (B, NPTS, 1), jnp.float32, -0.5, 0.5)
    tvals = jnp.where(cat <= 1, T1, jnp.where(cat <= 3, T2, mid))
    coords = jnp.concatenate([xyz, tvals], axis=-1)            # (B, NPTS, 4)

    params_main = init_mlp(k_main, 4, HIDDEN)
    params_m1 = init_mlp(k_m1, 3, HIDDEN)
    params_m2 = init_mlp(k_m2, 3, HIDDEN)

    flat = coords.reshape(-1, 4)                               # (N, 4)
    xyz_flat = flat[:, :3]

    f_main = lambda x: mlp_sdf(params_main, x)
    f_m1 = lambda x: mlp_sdf(params_m1, x)
    f_m2 = lambda x: mlp_sdf(params_m2, x)

    pred_flat, grad_flat = jax.vmap(jax.value_and_grad(f_main))(flat)
    m1_flat, g1_flat = jax.vmap(jax.value_and_grad(f_m1))(xyz_flat)
    m2_flat, g2_flat = jax.vmap(jax.value_and_grad(f_m2))(xyz_flat)

    # single channel-major packed tensor -> one DMA stream into the kernel
    packed = jnp.stack([
        grad_flat[:, 0], grad_flat[:, 1], grad_flat[:, 2], grad_flat[:, 3],
        pred_flat, flat[:, 3], m1_flat, m2_flat,
        g1_flat[:, 0], g1_flat[:, 1], g1_flat[:, 2],
        g2_flat[:, 0], g2_flat[:, 1], g2_flat[:, 2],
    ], axis=0).astype(jnp.float32)                             # (14, N)

    ref = loss_reference(grad_flat, pred_flat, flat[:, 3], m1_flat, m2_flat,
                         g1_flat, g2_flat, T1, T2, SCALE)

    # Demo-sized tile (production default is tile=131072): tile=1024 at N=4096
    # exercises the multi-step init/accumulate/finalize path.
    out = loss_morphing_pallas(packed, t1=T1, t2=T2, scale=SCALE, tile=1024)
    out = jax.tree_util.tree_map(jax.block_until_ready, out)
    for k in ("sdf_constraint", "normal_constraint", "morphing_constraint"):
        assert jnp.allclose(out[k], ref[k], rtol=2e-4, atol=1e-3), (
            k, out[k], ref[k])

    # Also exercise the default (large-tile-clamped-to-N, single-step) path.
    out2 = loss_morphing_pallas(packed, t1=T1, t2=T2, scale=SCALE)
    out2 = jax.tree_util.tree_map(jax.block_until_ready, out2)
    for k in ("sdf_constraint", "normal_constraint", "morphing_constraint"):
        assert jnp.allclose(out2[k], ref[k], rtol=2e-4, atol=1e-3), (
            k, out2[k], ref[k])

    print("KERNEL_OK")
</pallas_src>

<mosaic_0001>
module attributes {stable_mosaic.version = 11 : i64} {
  func.func @_loss_kernel(%arg0: i32, %arg1: memref<14x1x8x128xf32, #tpu.memory_space<vmem>>, %arg2: memref<1x8x128xf32, #tpu.memory_space<vmem>>, %arg3: memref<1x8x128xf32, #tpu.memory_space<vmem>>, %arg4: memref<1x8x128xf32, #tpu.memory_space<vmem>>, %arg5: memref<8x128xf32, #tpu.memory_space<vmem>>, %arg6: memref<8x128xf32, #tpu.memory_space<vmem>>, %arg7: memref<8x128xf32, #tpu.memory_space<vmem>>) attributes {dimension_semantics = [#tpu.dimension_semantics<arbitrary>], iteration_bounds = array<i64: 4>, scalar_prefetch = 0 : i64, scratch_operands = 3 : i64, tpu.core_type = #tpu.core_type<tc>, window_params = [{transform_indices = @transform_0, window_bounds = array<i64: 14, 1, 8, 128>}, {pipeline_mode = #tpu.pipeline_mode<synchronous>, transform_indices = @transform_1, window_bounds = array<i64: 1, 8, 128>}, {pipeline_mode = #tpu.pipeline_mode<synchronous>, transform_indices = @transform_2, window_bounds = array<i64: 1, 8, 128>}, {pipeline_mode = #tpu.pipeline_mode<synchronous>, transform_indices = @transform_3, window_bounds = array<i64: 1, 8, 128>}]} {
    %c0_i32 = arith.constant 0 : i32
    %0 = arith.cmpi eq, %arg0, %c0_i32 : i32
    %1 = arith.extui %0 : i1 to i32
    %c0_i32_0 = arith.constant 0 : i32
    %2 = arith.cmpi ne, %1, %c0_i32_0 : i32
    scf.if %2 {
      %cst_66 = arith.constant 0.000000e+00 : f32
      %109 = vector.broadcast %cst_66 : f32 to vector<8x128xf32>
      %c0_67 = arith.constant 0 : index
      %c0_68 = arith.constant 0 : index
      %110 = vector.load %arg5[%c0_67, %c0_68] : memref<8x128xf32, #tpu.memory_space<vmem>>, vector<8x128xf32>
      tpu.vector_store %arg5[%c0_67, %c0_68], %109 {strides = array<i32>} : memref<8x128xf32, #tpu.memory_space<vmem>>, vector<8x128xf32>,
      %cst_69 = arith.constant 0.000000e+00 : f32
      %111 = vector.broadcast %cst_69 : f32 to vector<8x128xf32>
      %c0_70 = arith.constant 0 : index
      %c0_71 = arith.constant 0 : index
      %112 = vector.load %arg6[%c0_70, %c0_71] : memref<8x128xf32, #tpu.memory_space<vmem>>, vector<8x128xf32>
      tpu.vector_store %arg6[%c0_70, %c0_71], %111 {strides = array<i32>} : memref<8x128xf32, #tpu.memory_space<vmem>>, vector<8x128xf32>,
      %cst_72 = arith.constant 0.000000e+00 : f32
      %113 = vector.broadcast %cst_72 : f32 to vector<8x128xf32>
      %c0_73 = arith.constant 0 : index
      %c0_74 = arith.constant 0 : index
      %114 = vector.load %arg7[%c0_73, %c0_74] : memref<8x128xf32, #tpu.memory_space<vmem>>, vector<8x128xf32>
      tpu.vector_store %arg7[%c0_73, %c0_74], %113 {strides = array<i32>} : memref<8x128xf32, #tpu.memory_space<vmem>>, vector<8x128xf32>,
    } else {
    }
    %c0 = arith.constant 0 : index
    %c0_1 = arith.constant 0 : index
    %c0_2 = arith.constant 0 : index
    %c0_3 = arith.constant 0 : index
    %3 = vector.load %arg1[%c0, %c0_1, %c0_2, %c0_3] : memref<14x1x8x128xf32, #tpu.memory_space<vmem>>, vector<1x1x8x128xf32>
    %4 = vector.shape_cast %3 : vector<1x1x8x128xf32> to vector<8x128xf32>
    %c1 = arith.constant 1 : index
    %c0_4 = arith.constant 0 : index
    %c0_5 = arith.constant 0 : index
    %c0_6 = arith.constant 0 : index
    %5 = vector.load %arg1[%c1, %c0_4, %c0_5, %c0_6] : memref<14x1x8x128xf32, #tpu.memory_space<vmem>>, vector<1x1x8x128xf32>
    %6 = vector.shape_cast %5 : vector<1x1x8x128xf32> to vector<8x128xf32>
    %c2 = arith.constant 2 : index
    %c0_7 = arith.constant 0 : index
    %c0_8 = arith.constant 0 : index
    %c0_9 = arith.constant 0 : index
    %7 = vector.load %arg1[%c2, %c0_7, %c0_8, %c0_9] : memref<14x1x8x128xf32, #tpu.memory_space<vmem>>, vector<1x1x8x128xf32>
    %8 = vector.shape_cast %7 : vector<1x1x8x128xf32> to vector<8x128xf32>
    %c3 = arith.constant 3 : index
    %c0_10 = arith.constant 0 : index
    %c0_11 = arith.constant 0 : index
    %c0_12 = arith.constant 0 : index
    %9 = vector.load %arg1[%c3, %c0_10, %c0_11, %c0_12] : memref<14x1x8x128xf32, #tpu.memory_space<vmem>>, vector<1x1x8x128xf32>
    %10 = vector.shape_cast %9 : vector<1x1x8x128xf32> to vector<8x128xf32>
    %c4 = arith.constant 4 : index
    %c0_13 = arith.constant 0 : index
    %c0_14 = arith.constant 0 : index
    %c0_15 = arith.constant 0 : index
    %11 = vector.load %arg1[%c4, %c0_13, %c0_14, %c0_15] : memref<14x1x8x128xf32, #tpu.memory_space<vmem>>, vector<1x1x8x128xf32>
    %12 = vector.shape_cast %11 : vector<1x1x8x128xf32> to vector<8x128xf32>
    %c5 = arith.constant 5 : index
    %c0_16 = arith.constant 0 : index
    %c0_17 = arith.constant 0 : index
    %c0_18 = arith.constant 0 : index
    %13 = vector.load %arg1[%c5, %c0_16, %c0_17, %c0_18] : memref<14x1x8x128xf32, #tpu.memory_space<vmem>>, vector<1x1x8x128xf32>
    %14 = vector.shape_cast %13 : vector<1x1x8x128xf32> to vector<8x128xf32>
    %c6 = arith.constant 6 : index
    %c0_19 = arith.constant 0 : index
    %c0_20 = arith.constant 0 : index
    %c0_21 = arith.constant 0 : index
    %15 = vector.load %arg1[%c6, %c0_19, %c0_20, %c0_21] : memref<14x1x8x128xf32, #tpu.memory_space<vmem>>, vector<1x1x8x128xf32>
    %16 = vector.shape_cast %15 : vector<1x1x8x128xf32> to vector<8x128xf32>
    %c7 = arith.constant 7 : index
    %c0_22 = arith.constant 0 : index
    %c0_23 = arith.constant 0 : index
    %c0_24 = arith.constant 0 : index
    %17 = vector.load %arg1[%c7, %c0_22, %c0_23, %c0_24] : memref<14x1x8x128xf32, #tpu.memory_space<vmem>>, vector<1x1x8x128xf32>
    %18 = vector.shape_cast %17 : vector<1x1x8x128xf32> to vector<8x128xf32>
    %cst = arith.constant -1.000000e+00 : f32
    %19 = vector.broadcast %cst : f32 to vector<8x128xf32>
    %20 = arith.cmpf oeq, %14, %19 : vector<8x128xf32>
    %cst_25 = arith.constant 1.000000e+00 : f32
    %21 = vector.broadcast %cst_25 : f32 to vector<8x128xf32>
    %22 = arith.cmpf oeq, %14, %21 : vector<8x128xf32>
    %23 = arith.mulf %4, %4 : vector<8x128xf32>
    %24 = arith.mulf %6, %6 : vector<8x128xf32>
    %25 = arith.addf %23, %24 : vector<8x128xf32>
    %26 = arith.mulf %8, %8 : vector<8x128xf32>
    %27 = arith.addf %25, %26 : vector<8x128xf32>
    %28 = math.sqrt %27 : vector<8x128xf32>
    %29 = arith.subf %18, %12 : vector<8x128xf32>
    %30 = arith.mulf %12, %12 : vector<8x128xf32>
    %cst_26 = arith.constant 0.000000e+00 : f32
    %31 = vector.broadcast %cst_26 : f32 to vector<8x128xf32>
    %32 = arith.subf %31, %30 : vector<8x128xf32>
    %33 = math.exp %32 : vector<8x128xf32>
    %34 = arith.mulf %29, %33 : vector<8x128xf32>
    %cst_27 = arith.constant -5.000000e-01 : f32
    %35 = vector.broadcast %cst_27 : f32 to vector<8x128xf32>
    %36 = arith.mulf %35, %34 : vector<8x128xf32>
    %37 = arith.mulf %36, %28 : vector<8x128xf32>
    %38 = arith.addf %10, %37 : vector<8x128xf32>
    %39 = arith.mulf %38, %38 : vector<8x128xf32>
    %c0_28 = arith.constant 0 : index
    %c0_29 = arith.constant 0 : index
    %40 = vector.load %arg7[%c0_28, %c0_29] : memref<8x128xf32, #tpu.memory_space<vmem>>, vector<8x128xf32>
    %41 = arith.addf %40, %39 : vector<8x128xf32>
    %c0_30 = arith.constant 0 : index
    %c0_31 = arith.constant 0 : index
    %42 = vector.load %arg7[%c0_30, %c0_31] : memref<8x128xf32, #tpu.memory_space<vmem>>, vector<8x128xf32>
    tpu.vector_store %arg7[%c0_30, %c0_31], %41 {strides = array<i32>} : memref<8x128xf32, #tpu.memory_space<vmem>>, vector<8x128xf32>,
    %43 = arith.subf %16, %12 : vector<8x128xf32>
    %44 = arith.mulf %43, %43 : vector<8x128xf32>
    %cst_32 = arith.constant 0.000000e+00 : f32
    %45 = vector.broadcast %cst_32 : f32 to vector<8x128xf32>
    %46 = arith.select %20, %44, %45 : vector<8x128xi1>, vector<8x128xf32>
    %47 = arith.mulf %29, %29 : vector<8x128xf32>
    %48 = arith.select %22, %47, %46 : vector<8x128xi1>, vector<8x128xf32>
    %c0_33 = arith.constant 0 : index
    %c0_34 = arith.constant 0 : index
    %49 = vector.load %arg5[%c0_33, %c0_34] : memref<8x128xf32, #tpu.memory_space<vmem>>, vector<8x128xf32>
    %50 = arith.addf %49, %48 : vector<8x128xf32>
    %c0_35 = arith.constant 0 : index
    %c0_36 = arith.constant 0 : index
    %51 = vector.load %arg5[%c0_35, %c0_36] : memref<8x128xf32, #tpu.memory_space<vmem>>, vector<8x128xf32>
    tpu.vector_store %arg5[%c0_35, %c0_36], %50 {strides = array<i32>} : memref<8x128xf32, #tpu.memory_space<vmem>>, vector<8x128xf32>,
    %c8 = arith.constant 8 : index
    %c0_37 = arith.constant 0 : index
    %c0_38 = arith.constant 0 : index
    %c0_39 = arith.constant 0 : index
    %52 = vector.load %arg1[%c8, %c0_37, %c0_38, %c0_39] : memref<14x1x8x128xf32, #tpu.memory_space<vmem>>, vector<1x1x8x128xf32>
    %53 = vector.shape_cast %52 : vector<1x1x8x128xf32> to vector<8x128xf32>
    %c9 = arith.constant 9 : index
    %c0_40 = arith.constant 0 : index
    %c0_41 = arith.constant 0 : index
    %c0_42 = arith.constant 0 : index
    %54 = vector.load %arg1[%c9, %c0_40, %c0_41, %c0_42] : memref<14x1x8x128xf32, #tpu.memory_space<vmem>>, vector<1x1x8x128xf32>
    %55 = vector.shape_cast %54 : vector<1x1x8x128xf32> to vector<8x128xf32>
    %c10 = arith.constant 10 : index
    %c0_43 = arith.constant 0 : index
    %c0_44 = arith.constant 0 : index
    %c0_45 = arith.constant 0 : index
    %56 = vector.load %arg1[%c10, %c0_43, %c0_44, %c0_45] : memref<14x1x8x128xf32, #tpu.memory_space<vmem>>, vector<1x1x8x128xf32>
    %57 = vector.shape_cast %56 : vector<1x1x8x128xf32> to vector<8x128xf32>
    %c11 = arith.constant 11 : index
    %c0_46 = arith.constant 0 : index
    %c0_47 = arith.constant 0 : index
    %c0_48 = arith.constant 0 : index
    %58 = vector.load %arg1[%c11, %c0_46, %c0_47, %c0_48] : memref<14x1x8x128xf32, #tpu.memory_space<vmem>>, vector<1x1x8x128xf32>
    %59 = vector.shape_cast %58 : vector<1x1x8x128xf32> to vector<8x128xf32>
    %c12 = arith.constant 12 : index
    %c0_49 = arith.constant 0 : index
    %c0_50 = arith.constant 0 : index
    %c0_51 = arith.constant 0 : index
    %60 = vector.load %arg1[%c12, %c0_49, %c0_50, %c0_51] : memref<14x1x8x128xf32, #tpu.memory_space<vmem>>, vector<1x1x8x128xf32>
    %61 = vector.shape_cast %60 : vector<1x1x8x128xf32> to vector<8x128xf32>
    %c13 = arith.constant 13 : index
    %c0_52 = arith.constant 0 : index
    %c0_53 = arith.constant 0 : index
    %c0_54 = arith.constant 0 : index
    %62 = vector.load %arg1[%c13, %c0_52, %c0_53, %c0_54] : memref<14x1x8x128xf32, #tpu.memory_space<vmem>>, vector<1x1x8x128xf32>
    %63 = vector.shape_cast %62 : vector<1x1x8x128xf32> to vector<8x128xf32>
    %cst_55 = arith.constant 1.000000e-16 : f32
    %64 = vector.broadcast %cst_55 : f32 to vector<8x128xf32>
    %65 = arith.maximumf %27, %64 : vector<8x128xf32>
    %66 = arith.mulf %53, %53 : vector<8x128xf32>
    %67 = arith.mulf %55, %55 : vector<8x128xf32>
    %68 = arith.addf %66, %67 : vector<8x128xf32>
    %69 = arith.mulf %57, %57 : vector<8x128xf32>
    %70 = arith.addf %68, %69 : vector<8x128xf32>
    %71 = arith.mulf %59, %59 : vector<8x128xf32>
    %72 = arith.mulf %61, %61 : vector<8x128xf32>
    %73 = arith.addf %71, %72 : vector<8x128xf32>
    %74 = arith.mulf %63, %63 : vector<8x128xf32>
    %75 = arith.addf %73, %74 : vector<8x128xf32>
    %76 = arith.mulf %4, %53 : vector<8x128xf32>
    %77 = arith.mulf %6, %55 : vector<8x128xf32>
    %78 = arith.addf %76, %77 : vector<8x128xf32>
    %79 = arith.mulf %8, %57 : vector<8x128xf32>
    %80 = arith.addf %78, %79 : vector<8x128xf32>
    %81 = arith.mulf %4, %59 : vector<8x128xf32>
    %82 = arith.mulf %6, %61 : vector<8x128xf32>
    %83 = arith.addf %81, %82 : vector<8x128xf32>
    %84 = arith.mulf %8, %63 : vector<8x128xf32>
    %85 = arith.addf %83, %84 : vector<8x128xf32>
    %cst_56 = arith.constant 1.000000e-16 : f32
    %86 = vector.broadcast %cst_56 : f32 to vector<8x128xf32>
    %87 = arith.maximumf %70, %86 : vector<8x128xf32>
    %88 = arith.mulf %65, %87 : vector<8x128xf32>
    %89 = math.rsqrt %88 : vector<8x128xf32>
    %90 = arith.mulf %80, %89 : vector<8x128xf32>
    %cst_57 = arith.constant 1.000000e-16 : f32
    %91 = vector.broadcast %cst_57 : f32 to vector<8x128xf32>
    %92 = arith.maximumf %75, %91 : vector<8x128xf32>
    %93 = arith.mulf %65, %92 : vector<8x128xf32>
    %94 = math.rsqrt %93 : vector<8x128xf32>
    %95 = arith.mulf %85, %94 : vector<8x128xf32>
    %cst_58 = arith.constant 1.000000e+00 : f32
    %96 = vector.broadcast %cst_58 : f32 to vector<8x128xf32>
    %97 = arith.subf %96, %90 : vector<8x128xf32>
    %cst_59 = arith.constant 0.000000e+00 : f32
    %98 = vector.broadcast %cst_59 : f32 to vector<8x128xf32>
    %99 = arith.select %20, %97, %98 : vector<8x128xi1>, vector<8x128xf32>
    %cst_60 = arith.constant 1.000000e+00 : f32
    %100 = vector.broadcast %cst_60 : f32 to vector<8x128xf32>
    %101 = arith.subf %100, %95 : vector<8x128xf32>
    %102 = arith.select %22, %101, %99 : vector<8x128xi1>, vector<8x128xf32>
    %c0_61 = arith.constant 0 : index
    %c0_62 = arith.constant 0 : index
    %103 = vector.load %arg6[%c0_61, %c0_62] : memref<8x128xf32, #tpu.memory_space<vmem>>, vector<8x128xf32>
    %104 = arith.addf %103, %102 : vector<8x128xf32>
    %c0_63 = arith.constant 0 : index
    %c0_64 = arith.constant 0 : index
    %105 = vector.load %arg6[%c0_63, %c0_64] : memref<8x128xf32, #tpu.memory_space<vmem>>, vector<8x128xf32>
    tpu.vector_store %arg6[%c0_63, %c0_64], %104 {strides = array<i32>} : memref<8x128xf32, #tpu.memory_space<vmem>>, vector<8x128xf32>,
    %c3_i32 = arith.constant 3 : i32
    %106 = arith.cmpi eq, %arg0, %c3_i32 : i32
    %107 = arith.extui %106 : i1 to i32
    %c0_i32_65 = arith.constant 0 : i32
    %108 = arith.cmpi ne, %107, %c0_i32_65 : i32
    scf.if %108 {
      %c0_66 = arith.constant 0 : index
      %c0_67 = arith.constant 0 : index
      %109 = vector.load %arg5[%c0_66, %c0_67] : memref<8x128xf32, #tpu.memory_space<vmem>>, vector<8x128xf32>
      %110 = vector.shape_cast %109 : vector<8x128xf32> to vector<1x8x128xf32>
      %cst_68 = arith.constant dense<0.000000e+00> : vector<1xf32>
      %111 = vector.multi_reduction <add>, %110, %cst_68 [1, 2] : vector<1x8x128xf32> to vector<1xf32>
      %112 = vector.shape_cast %111 : vector<1xf32> to vector<1x1x1xf32>
      %113 = vector.extract %112[0, 0, 0] : f32 from vector<1x1x1xf32>
      %114 = vector.broadcast %113 : f32 to vector<1x8x128xf32>
      %c0_69 = arith.constant 0 : index
      %c0_70 = arith.constant 0 : index
      %c0_71 = arith.constant 0 : index
      %115 = vector.load %arg2[%c0_69, %c0_70, %c0_71] : memref<1x8x128xf32, #tpu.memory_space<vmem>>, vector<1x8x128xf32>
      tpu.vector_store %arg2[%c0_69, %c0_70, %c0_71], %114 {strides = array<i32>} : memref<1x8x128xf32, #tpu.memory_space<vmem>>, vector<1x8x128xf32>,
      %c0_72 = arith.constant 0 : index
      %c0_73 = arith.constant 0 : index
      %116 = vector.load %arg6[%c0_72, %c0_73] : memref<8x128xf32, #tpu.memory_space<vmem>>, vector<8x128xf32>
      %117 = vector.shape_cast %116 : vector<8x128xf32> to vector<1x8x128xf32>
      %cst_74 = arith.constant dense<0.000000e+00> : vector<1xf32>
      %118 = vector.multi_reduction <add>, %117, %cst_74 [1, 2] : vector<1x8x128xf32> to vector<1xf32>
      %119 = vector.shape_cast %118 : vector<1xf32> to vector<1x1x1xf32>
      %120 = vector.extract %119[0, 0, 0] : f32 from vector<1x1x1xf32>
      %121 = vector.broadcast %120 : f32 to vector<1x8x128xf32>
      %c0_75 = arith.constant 0 : index
      %c0_76 = arith.constant 0 : index
      %c0_77 = arith.constant 0 : index
      %122 = vector.load %arg3[%c0_75, %c0_76, %c0_77] : memref<1x8x128xf32, #tpu.memory_space<vmem>>, vector<1x8x128xf32>
      tpu.vector_store %arg3[%c0_75, %c0_76, %c0_77], %121 {strides = array<i32>} : memref<1x8x128xf32, #tpu.memory_space<vmem>>, vector<1x8x128xf32>,
      %c0_78 = arith.constant 0 : index
      %c0_79 = arith.constant 0 : index
      %123 = vector.load %arg7[%c0_78, %c0_79] : memref<8x128xf32, #tpu.memory_space<vmem>>, vector<8x128xf32>
      %124 = vector.shape_cast %123 : vector<8x128xf32> to vector<1x8x128xf32>
      %cst_80 = arith.constant dense<0.000000e+00> : vector<1xf32>
      %125 = vector.multi_reduction <add>, %124, %cst_80 [1, 2] : vector<1x8x128xf32> to vector<1xf32>
      %126 = vector.shape_cast %125 : vector<1xf32> to vector<1x1x1xf32>
      %127 = vector.extract %126[0, 0, 0] : f32 from vector<1x1x1xf32>
      %128 = vector.broadcast %127 : f32 to vector<1x8x128xf32>
      %c0_81 = arith.constant 0 : index
      %c0_82 = arith.constant 0 : index
      %c0_83 = arith.constant 0 : index
      %129 = vector.load %arg4[%c0_81, %c0_82, %c0_83] : memref<1x8x128xf32, #tpu.memory_space<vmem>>, vector<1x8x128xf32>
      tpu.vector_store %arg4[%c0_81, %c0_82, %c0_83], %128 {strides = array<i32>} : memref<1x8x128xf32, #tpu.memory_space<vmem>>, vector<1x8x128xf32>,
    } else {
    }
    return
  }
  func.func @transform_0(%arg0: i32) -> (i32, i32, i32, i32) {
    %c0_i32 = arith.constant 0 : i32
    %c0_i32_0 = arith.constant 0 : i32
    %c0_i32_1 = arith.constant 0 : i32
    %c0_i32_2 = arith.constant 0 : i32
    return %c0_i32, %arg0, %c0_i32_0, %c0_i32_1 : i32, i32, i32, i32
  }
  func.func @transform_1(%arg0: i32) -> (i32, i32, i32) {
    %c0_i32 = arith.constant 0 : i32
    %c0_i32_0 = arith.constant 0 : i32
    %c0_i32_1 = arith.constant 0 : i32
    %c0_i32_2 = arith.constant 0 : i32
    return %c0_i32, %c0_i32_0, %c0_i32_1 : i32, i32, i32
  }
  func.func @transform_2(%arg0: i32) -> (i32, i32, i32) {
    %c0_i32 = arith.constant 0 : i32
    %c0_i32_0 = arith.constant 0 : i32
    %c0_i32_1 = arith.constant 0 : i32
    %c0_i32_2 = arith.constant 0 : i32
    return %c0_i32, %c0_i32_0, %c0_i32_1 : i32, i32, i32
  }
  func.func @transform_3(%arg0: i32) -> (i32, i32, i32) {
    %c0_i32 = arith.constant 0 : i32
    %c0_i32_0 = arith.constant 0 : i32
    %c0_i32_1 = arith.constant 0 : i32
    %c0_i32_2 = arith.constant 0 : i32
    return %c0_i32, %c0_i32_0, %c0_i32_1 : i32, i32, i32
  }
}

</mosaic_0001>

<bundles_post_ra>
// kernel: tpu_custom_call.1
= control target key start
LH: loop header
LB: loop body
LE: loop exit
PB: predicated region body
PF: predicated region fallthrough
CT: control target
= control target key end

     0   :  { %9 = vsyncpa [#allocation6], 0  ;;  %s905_s0 = inlined_call_operand.hbm [shape: f32[14,4,8,128], index: 0, kind: input, shape index: {}]   ;;  %s906_s1 = inlined_call_operand.hbm [shape: f32[1,8,128], index: 1, kind: output, shape index: {0}]   ;;  %s907_s2 = inlined_call_operand.hbm [shape: f32[1,8,128], index: 2, kind: output, shape index: {1}]   ;;  %s908_s3 = inlined_call_operand.hbm [shape: f32[1,8,128], index: 3, kind: output, shape index: {2}]  }
   0x1   :  { %11 = vsyncpa [#allocation6 + $0x1], 0 }
   0x2   :  { %12 = vsyncpa [#allocation7], 0 }
   0x3   :  { %13 = vsyncpa [#allocation10], 0  ;;  %s705_s12 = smov 0   ;;  %s707_s13 = smov 0  }
   0x4   :  { %s709_s14 = smov 0   ;;  %s711_s15 = smov 0  }
   0x5 LB: > { %s724_s16 = sadd.s32 4294967295, %s675_s15   ;;  %s727_s17 = sadd.s32 1, %s675_s15   ;;  %s675_s15 = sphi %s711_s15, %s914_s15   ;;  %s671_s14 = sphi %s709_s14, %s913_s14   ;;  %s667_s13 = sphi %s707_s13, %s912_s13   ;;  %s663_s12 = sphi %s705_s12, %s911_s12  }
   0x6   : > { %s23_s18 = ssub.s32 %s675_s15, %s727_s17  ;;  %s26_s19 = sadd.s32 1, %s671_s14 }
   0x7   : > { %p24_p0 = scmp.eq.s32.totalorder %s23_s18, 0  ;;  %p33_p1 = scmp.ne.s32.totalorder %s671_s14, %s667_s13 }
   0x8   : > { %p34_p2 = scmp.eq.s32.totalorder %s675_s15, 0  ;;  %p39_p3 = scmp.ne.s32.totalorder %s667_s13, %s663_s12 }
   0x9   : > { %s737_s20 = scalar_select %p24_p0, %s671_s14, %s26_s19  }
   0xa   : > { %p35_p4 = por %p34_p2, %p33_p1  ;;  %p40_p5 = scmp.eq.s32.totalorder %s724_s16, 0 }
   0xb   : > { %p471_p6 = scmp.lt.s32.totalorder %s675_s15, 4  ;;  %s126_s22 = sand.u32 1, %s671_s14  }
   0xc   : > { %p741_p7 = por %p40_p5, %p39_p3  ;;  %s445_s23 = smul.u32 112, %s126_s22 }
   0xd   : > { %s420_s24 = sshll.u32 %s675_s15, 7  ;;  %p747_p8 = pnand %p471_p6, %p35_p4 }
   0xe   : > { %s754_s28 = scalar_lea.hbm %s905_s0, %s420_s24  ;;  %s130_s29 = scalar_lea.vmem [#allocation5], %s445_s23 }
   0xf   : > { %s136_s30 = sshll.u32 %s130_s29, 4  ;;  %s758_s4 = scalar_lea.sflag [#allocation6], %s126_s22  ;;  %s756_s30 = int_to_ptr.vmem [resolvable:$true] %s136_s30 }
  0x10   : > { %s525_s5 = scalar_lea.hbm %s754_s28, 1792  ;;  %p527_p10 = pneg %p747_p8 }
  0x11   : > { %p526_p9 = scmp.ne.s32.totalorder %s754_s28, %s525_s5  ;;  %s530_s8 = scalar_lea.hbm %s905_s0, 7168 }
  0x12   : > { %p531_p13 = scmp.lt.u32.totalorder %s754_s28, %s905_s0  ;;  %p532_p0 = scmp.lt.u32.totalorder %s530_s8, %s525_s5 }
  0x13   : > { %p528_p11 = pnand %p527_p10, %p526_p9  ;;  %p534_p2 = scmp.lt.u32.totalorder %s525_s5, %s754_s28 }
  0x14   : > { %p533_p1 = por %p532_p0, %p531_p13 }
  0x15   : > { %p529_p12 = pneg %p528_p11 }
  0x16   : > { %p535_p3 = por %p534_p2, %p533_p1 }
  0x18   : > { %p536_p4 = pnand %p535_p3, %p529_p12 }
  0x1a   : > { %539 = shalt.err (!%p536_p4)
}
  0x1b   : > { %s540_s11 = scalar_lea.vmem %s756_s30, 1792  ;;  %s677_s12 = smov [#allocation5]  }
  0x1c   : > { %p541_p5 = scmp.ne.s32.totalorder %s756_s30, %s540_s11  ;;  %s545_s18 = sshll.u32 %s677_s12, 4  ;;  %s546_s18 = int_to_ptr.vmem [resolvable:$false] %s545_s18 }
  0x1d   : > { %s547_s19 = scalar_lea.vmem %s546_s18, 3584  ;;  %p548_p11 = scmp.lt.s32.totalorder %s756_s30, %s546_s18 }
  0x1e   : > { %p543_p6 = pnand %p541_p5, %p527_p10  ;;  %p549_p13 = scmp.lt.s32.totalorder %s547_s19, %s540_s11 }
  0x20   : > { %p544_p9 = pneg %p543_p6  ;;  %p550_p0 = por %p549_p13, %p548_p11 }
  0x22   : > { %p551_p1 = pnand %p550_p0, %p544_p9 }
  0x24   : > { %554 = shalt.err (!%p551_p1)
}
  0x25   : > { %s678_s22 = smov 512   ;;  %s679_s23 = smov 128  }
  0x26   : > { %s680_s24 = smov 8   ;;  %p421_p10 = scmp.ge.s32.totalorder %s675_s15, 1 }
  0x27   : > { %470 = dma.hbm_to_vmem [thread:$0]  (!%p747_p8), %s754_s28, 1792, %s756_s30, %s758_s4, %s678_s22, %s679_s23, %s680_s24  }
  0x28   : > { %p144_p12 = scmp.lt.s32.totalorder %s675_s15, 5 }
  0x2a   : > { %p145_p2 = pnand %p421_p10, %p144_p12 }
  0x2b   : > { %s150_s26 = sand.u32 (!%p145_p2), 1, %s667_s13  }
  0x2c   : > { %148 = sbr.rel (%p145_p2) target bundleno = 381 (0x17d), region = 24  ;;  %s151_s29 = scalar_lea.sflag (!%p145_p2), [#allocation6], %s150_s26 }
  0x2d   : > { %s446_s27 = smul.u32 (!%p145_p2), 112, %s150_s26 }
  0x2f   : > { %s789_s5 = scalar_lea.vmem (!%p145_p2), [#allocation5], %s446_s27 }
  0x33   : > { %650 = dma.done.wait (%p741_p7), %s151_s29, 1792  }
  0x34   : > { %652 = vsyncadd (%p741_p7), %s151_s29, 4294965504  ;;  %p422_p3 = scmp.ne.s32.totalorder %s724_s16, 0 }
  0x35   : > { %v681_v0 = vmov (!%p422_p3), 0.0  }
  0x36   : > { %175 = sbr.rel (%p422_p3) target bundleno = 61 (0x3d), region = 32  ;;  %176 = vst [vmem:[#allocation2] sm:$0xff] (!%p422_p3), %v681_v0  ;;  %177 = vst [vmem:[#allocation3] sm:$0xff] (!%p422_p3), %v681_v0 }
  0x37   : > { %178 = vst [vmem:[#allocation4] sm:$0xff] (!%p422_p3), %v681_v0 }
  0x3d PF: > { %v179_v1 = vld [vmem:[%s789_s5] sm:$0xff]  ;;  %v423_v2 = vld [vmem:[%s789_s5 + $0x8] sm:$0xff]  ;;  %v799_v3 = vld [vmem:[%s789_s5 + $0x10] sm:$0xff]  ;;  %p436_p7 = scmp.ne.s32.totalorder %s724_s16, 3 }
  0x3e   : > { %v426_v4 = vld [vmem:[%s789_s5 + $0x20] sm:$0xff]  ;;  %v429_v5 = vld [vmem:[%s789_s5 + $0x38] sm:$0xff]  ;;  %v196_v6 = vmul.f32 %v179_v1, %v179_v1  ;;  %v197_v7 = vmul.f32 %v423_v2, %v423_v2  ;;  %v199_v8 = vmul.f32 %v799_v3, %v799_v3  ;;  %v806_v11 = vld [vmem:[%s789_s5 + $0x28] sm:$0xff] }
  0x3f   : > { %v208_v9 = vsub.f32 %v429_v5, %v426_v4  ;;  %v209_v10 = vmul.f32 %v426_v4, %v426_v4  ;;  %v428_v12 = vld [vmem:[%s789_s5 + $0x30] sm:$0xff]  ;;  %vm194_vm0 = vcmp.eq.f32.partialorder %v806_v11, -1.0  ;;  %v430_v15 = vld [vmem:[%s789_s5 + $0x40] sm:$0xff]  ;;  %v431_v16 = vld [vmem:[%s789_s5 + $0x48] sm:$0xff]  ;;  %vm195_vm1 = vcmp.eq.f32.partialorder %v806_v11, 1.0 }
  0x40   : > { %v198_v13 = vadd.f32 %v197_v7, %v196_v6  ;;  %v221_v14 = vsub.f32 %v428_v12, %v426_v4  ;;  %v432_v19 = vld [vmem:[%s789_s5 + $0x50] sm:$0xff]  ;;  %v433_v20 = vld [vmem:[%s789_s5 + $0x58] sm:$0xff]  ;;  %v434_v21 = vld [vmem:[%s789_s5 + $0x60] sm:$0xff]  ;;  %v242_v22 = vmul.f32 %v430_v15, %v430_v15  ;;  %v243_v23 = vmul.f32 %v431_v16, %v431_v16 }
  0x41   : > { %v210_v17 = vsub.f32 0.0, %v209_v10  ;;  %v224_v18 = vmul.f32 %v208_v9, %v208_v9  ;;  %v435_v26 = vld [vmem:[%s789_s5 + $0x68] sm:$0xff]  ;;  %v245_v27 = vmul.f32 %v432_v19, %v432_v19  ;;  %v247_v28 = vmul.f32 %v433_v20, %v433_v20  ;;  %v425_v61 = vld [vmem:[%s789_s5 + $0x18] sm:$0xff] }
  0x42   : > { %v200_v24 = vadd.f32 %v199_v8, %v198_v13  ;;  %v222_v25 = vmul.f32 %v221_v14, %v221_v14  ;;  %v244_v30 = vadd.f32 %v243_v23, %v242_v22  ;;  %v248_v31 = vmul.f32 %v434_v21, %v434_v21  ;;  %v226_v32 = vld [vmem:[#allocation2] sm:$0xff]  ;;  %v218_v4 = vld [vmem:[#allocation4] sm:$0xff] }
  0x43   : > { %v211_v29 = vmul.f32 1.442695, %v210_v17  ;;  %v250_v33 = vmul.f32 %v435_v26, %v435_v26  ;;  %v252_v44 = vmul.f32 %v430_v15, %v179_v1  ;;  %v253_v45 = vmul.f32 %v431_v16, %v423_v2 }
  0x44   : > { %517 = vrsqrt.f32 %v200_v24  ;;  %v223_v34 = vsel %vm194_vm0, %v222_v25, 0.0  ;;  %v246_v35 = vadd.f32 %v245_v27, %v244_v30  ;;  %v241_v37 = vmax.f32 %v200_v24, 1e-16 }
  0x45   : > { %519 = vpow2.f32 %v211_v29  ;;  %v225_v36 = vsel %vm195_vm1, %v224_v18, %v223_v34  ;;  %v249_v38 = vadd.f32 %v248_v31, %v247_v28  ;;  %v257_v47 = vmul.f32 %v433_v20, %v179_v1 }
  0x46   : > { %v227_v39 = vadd.f32 %v226_v32, %v225_v36  ;;  %v262_v41 = vmax.f32 %v246_v35, 1e-16  ;;  %v258_v48 = vmul.f32 %v434_v21, %v423_v2  ;;  %vm203_vm2 = vcmp.eq.f32.partialorder %v200_v24, inf }
  0x47   : > { %v251_v40 = vadd.f32 %v250_v33, %v249_v38  ;;  %v206_v50 = vand.u32 2147483648, %v200_v24  ;;  %vm205_vm3 = vcmp.eq.f32.partialorder %v200_v24, 0.0  ;;  %v254_v53 = vadd.f32 %v253_v45, %v252_v44 }
  0x48   : > { %228 = vst [vmem:[#allocation2] sm:$0xff] %v227_v39  ;;  %v263_v42 = vmul.f32 %v262_v41, %v241_v37  ;;  %v255_v54 = vmul.f32 %v432_v19, %v799_v3  ;;  %v259_v57 = vadd.f32 %v258_v48, %v257_v47  ;;  %v260_v58 = vmul.f32 %v435_v26, %v799_v3  ;;  %v274_v3 = vld [vmem:[#allocation3] sm:$0xff] }
  0x49   : > { %v266_v43 = vmax.f32 %v251_v40, 1e-16 }
  0x4a   : > { %521 = vrsqrt.f32 %v263_v42  ;;  %v256_v62 = vadd.f32 %v255_v54, %v254_v53  ;;  %v261_v0 = vadd.f32 %v260_v58, %v259_v57 }
  0x4b   : > { %v267_v46 = vmul.f32 %v266_v43, %v241_v37 }
  0x4d   : > { %523 = vrsqrt.f32 %v267_v46 }
  0x4e   : > { %v518_v49 = vpop.eup %517 }
  0x4f   : > { %v520_v51 = vpop.eup %519  ;;  %v202_v52 = vmul.f32 %v518_v49, %v200_v24  ;;  %v281_v17 = vld [vmem:[#allocation2] sm:$0xff] (!%p436_p7) }
  0x50   : > { %v213_v55 = vmul.f32 %v520_v51, %v208_v9  ;;  %282 = vadd.xlane.f32.xlu0 (!%p436_p7), %v281_v17 }
  0x51   : > { %v204_v56 = vsel %vm203_vm2, %v200_v24, %v202_v52 }
  0x52   : > { %v207_v59 = vsel %vm205_vm3, %v206_v50, %v204_v56  ;;  %v214_v60 = vmul.f32 -0.5, %v213_v55 }
  0x54   : > { %v215_v63 = vmul.f32 %v214_v60, %v207_v59  ;;  %v522_v1 = vpop.eup %521 }
  0x55   : > { %v265_v5 = vmul.f32 %v522_v1, %v256_v62 }
  0x56   : > { %v216_v2 = vadd.f32 %v425_v61, %v215_v63 }
  0x57   : > { %v524_v6 = vpop.eup %523  ;;  %v270_v10 = vsub.f32 1.0, %v265_v5 }
  0x58   : > { %v217_v7 = vmul.f32 %v216_v2, %v216_v2  ;;  %v269_v8 = vmul.f32 %v524_v6, %v261_v0 }
  0x59   : > { %v271_v9 = vsel %vm194_vm0, %v270_v10, 0.0  ;;  %280 = sbr.rel (%p436_p7) target bundleno = 310 (0x136), region = 36 }
  0x5a   : > { %v219_v12 = vadd.f32 %v218_v4, %v217_v7  ;;  %v272_v13 = vsub.f32 1.0, %v269_v8 }
  0x5c   : > { %220 = vst [vmem:[#allocation4] sm:$0xff] %v219_v12  ;;  %v273_v14 = vsel %vm195_vm1, %v272_v13, %v271_v9 }
  0x5d   : > { %v275_v15 = vadd.f32 %v274_v3, %v273_v14 }
  0x5f   : > { %276 = vst [vmem:[#allocation3] sm:$0xff] %v275_v15 }
  0x63   : > { %v305_v16 = vld [vmem:[#allocation4] sm:$0xff] }
  0x64   : > { %306 = vadd.xlane.f32.xlu1 %v305_v16 }
  0x66   : > { %v293_v18 = vld [vmem:[#allocation3] sm:$0xff] }
  0x67   : > { %294 = vadd.xlane.f32.xlu0 %v293_v18 }
  0xdd   : > { %v283_v20 = vpop.xlane.xlu0 %282 }
  0xde   : > { %v284_v22 = vrot.slane %v283_v20, 4 }
  0xe0   : > { %v285_v24 = vadd.f32 %v284_v22, %v283_v20 }
  0xe2   : > { %v286_v26 = vrot.slane %v285_v24, 2 }
  0xe4   : > { %v287_v29 = vadd.f32 %v286_v26, %v285_v24 }
  0xe6   : > { %v288_v32 = vrot.slane %v287_v29, 1 }
  0xe8   : > { %v289_v34 = vadd.f32 %v288_v32, %v287_v29 }
  0xea   : > { %447 = vpush %v289_v34 }
  0xf1   : > { %v307_v19 = vpop.xlane.xlu1 %306 }
  0xf2   : > { %v308_v21 = vrot.slane %v307_v19, 4 }
  0xf4   : > { %v309_v23 = vadd.f32 %v308_v21, %v307_v19  ;;  %v295_v25 = vpop.xlane.xlu0 %294 }
  0xf5   : > { %v296_v27 = vrot.slane %v295_v25, 4 }
  0xf6   : > { %v310_v11 = vrot.slane %v309_v23, 2 }
  0xf7   : > { %v297_v28 = vadd.f32 %v296_v27, %v295_v25 }
  0xf8   : > { %v311_v30 = vadd.f32 %v310_v11, %v309_v23 }
  0xf9   : > { %v298_v31 = vrot.slane %v297_v28, 2 }
  0xfa   : > { %v312_v35 = vrot.slane %v311_v30, 1 }
  0xfb   : > { %v299_v33 = vadd.f32 %v298_v31, %v297_v28 }
  0xfc   : > { %v313_v38 = vadd.f32 %v312_v35, %v311_v30 }
  0xfd   : > { %v300_v36 = vrot.slane %v299_v33, 1 }
  0xff   : > { %v301_v37 = vadd.f32 %v300_v36, %v299_v33 }
 0x101   : > { %449 = vpush %v301_v37 }
 0x102   : > { %451 = vpush %v313_v38 }
 0x11b   : > { %s448_s15 = spop %447 }
 0x11c   : > { %v291_v39 = vstv %s448_s15 }
 0x11d   : > { %292 = vst [vmem:[#allocation8] sm:$0xff] %v291_v39 }
 0x132   : > { %s450_s21 = spop %449 }
 0x133   : > { %v303_v40 = vstv %s450_s21  ;;  %s452_s25 = spop %451 }
 0x134   : > { %304 = vst [vmem:[#allocation9] sm:$0xff] %v303_v40  ;;  %v315_v41 = vstv %s452_s25 }
 0x135   : > { %316 = vst [vmem:[#allocation11] sm:$0xff] %v315_v41 }
 0x136 PF: > { %p472_p8 = scmp.eq.s32.totalorder %s724_s16, 3  ;;  %s682_s28 = smov [#allocation9]  }
 0x137   : > { %s335_s30 = sshll.u32 %s682_s28, 4  ;;  %s683_s4 = smov [#allocation8]   ;;  %s336_s30 = int_to_ptr.vmem [resolvable:$true] %s335_s30 }
 0x138   : > { %s324_s6 = sshll.u32 %s683_s4, 4  ;;  %s555_s7 = scalar_lea.vmem %s336_s30, 128  ;;  %s325_s6 = int_to_ptr.vmem [resolvable:$true] %s324_s6 }
 0x139   : > { %p556_p4 = scmp.ne.s32.totalorder %s336_s30, %s555_s7  ;;  %p562_p9 = scmp.lt.s32.totalorder %s336_s30, %s336_s30 }
 0x13a   : > { %p563_p11 = scmp.lt.s32.totalorder %s555_s7, %s555_s7 }
 0x13b   : > { %p557_p5 = pnand %p556_p4, %p472_p8 }
 0x13c   : > { %p564_p13 = por %p563_p11, %p562_p9 }
 0x13d   : > { %p558_p6 = pneg %p557_p5 }
 0x13f   : > { %p565_p0 = pnand %p564_p13, %p558_p6 }
 0x141   : > { %568 = shalt.err (!%p565_p0)
}
 0x142   : > { %s569_s10 = scalar_lea.hbm %s907_s2, 128 }
 0x143   : > { %p570_p1 = scmp.ne.s32.totalorder %s907_s2, %s569_s10  ;;  %p575_p2 = scmp.lt.u32.totalorder %s569_s10, %s907_s2 }
 0x145   : > { %p571_p10 = pnand %p570_p1, %p472_p8 }
 0x147   : > { %p572_p12 = pneg %p571_p10 }
 0x149   : > { %p577_p3 = pnand %p575_p2, %p572_p12 }
 0x14b   : > { %580 = shalt.err (!%p577_p3)
}
 0x14c   : > { %458 = dma.vmem_to_hbm [thread:$0]  (%p472_p8), %s336_s30, 128, %s907_s2, [#allocation10]  }
 0x14d   : > { %s581_s24 = scalar_lea.vmem %s325_s6, 128  ;;  %p588_p6 = scmp.lt.s32.totalorder %s325_s6, %s325_s6 }
 0x14e   : > { %p582_p7 = scmp.ne.s32.totalorder %s325_s6, %s581_s24  ;;  %p589_p9 = scmp.lt.s32.totalorder %s581_s24, %s581_s24 }
 0x150   : > { %p583_p4 = pnand %p582_p7, %p472_p8  ;;  %p590_p11 = por %p589_p9, %p588_p6 }
 0x152   : > { %p584_p5 = pneg %p583_p4 }
 0x154   : > { %p591_p13 = pnand %p590_p11, %p584_p5 }
 0x156   : > { %594 = shalt.err (!%p591_p13)
}
 0x157   : > { %s595_s29 = scalar_lea.hbm %s906_s1, 128 }
 0x158   : > { %p596_p0 = scmp.ne.s32.totalorder %s906_s1, %s595_s29  ;;  %p601_p12 = scmp.lt.u32.totalorder %s595_s29, %s906_s1 }
 0x15a   : > { %p597_p1 = pnand %p596_p0, %p472_p8 }
 0x15c   : > { %p598_p10 = pneg %p597_p1 }
 0x15e   : > { %p603_p2 = pnand %p601_p12, %p598_p10 }
 0x160   : > { %606 = shalt.err (!%p603_p2)
}
 0x161   : > { %456 = dma.vmem_to_hbm [thread:$0]  (%p472_p8), %s325_s6, 128, %s906_s1, [#allocation7]  }
 0x162   : > { %s684_s4 = smov [#allocation11]  }
 0x163   : > { %s346_s7 = sshll.u32 %s684_s4, 4  ;;  %s347_s7 = int_to_ptr.vmem [resolvable:$true] %s346_s7 }
 0x164   : > { %s607_s8 = scalar_lea.vmem %s347_s7, 128  ;;  %p614_p5 = scmp.lt.s32.totalorder %s347_s7, %s347_s7 }
 0x165   : > { %p608_p3 = scmp.ne.s32.totalorder %s347_s7, %s607_s8  ;;  %p615_p6 = scmp.lt.s32.totalorder %s607_s8, %s607_s8 }
 0x167   : > { %p609_p7 = pnand %p608_p3, %p472_p8  ;;  %p616_p9 = por %p615_p6, %p614_p5 }
 0x169   : > { %p610_p4 = pneg %p609_p7 }
 0x16b   : > { %p617_p11 = pnand %p616_p9, %p610_p4 }
 0x16d   : > { %620 = shalt.err (!%p617_p11)
}
 0x16e   : > { %s621_s11 = scalar_lea.hbm %s908_s3, 128 }
 0x16f   : > { %p622_p13 = scmp.ne.s32.totalorder %s908_s3, %s621_s11  ;;  %p627_p10 = scmp.lt.u32.totalorder %s621_s11, %s908_s3 }
 0x171   : > { %p623_p0 = pnand %p622_p13, %p472_p8 }
 0x173   : > { %p624_p1 = pneg %p623_p0 }
 0x175   : > { %p629_p12 = pnand %p627_p10, %p624_p1 }
 0x177   : > { %632 = shalt.err (!%p629_p12)
}
 0x178   : > { %460 = dma.vmem_to_hbm [thread:$0]  (%p472_p8), %s347_s7, 128, %s908_s3, [#allocation10]  }
 0x179   : > { %654 = dma.done.wait (%p472_p8), [#allocation7], 128  }
 0x17a   : > { %656 = vsyncadd (%p472_p8), [#allocation7], 4294967168 }
 0x17b   : > { %658 = dma.done.wait (%p472_p8), [#allocation10], 256  }
 0x17c   : > { %660 = vsyncadd (%p472_p8), [#allocation10], 4294967040 }
 0x17d PF: > { %p16_p2 = scmp.ge.s32.totalorder %s727_s17, 6   ;;  %s911_s12 = smov %s667_s13 }
 0x17e   : > { %s912_s13 = smov %s671_s14  ;;  %s913_s14 = smov %s737_s20 }
 0x17f   : > { %s914_s15 = smov %s727_s17  ;;  %18 = sbr.rel (!%p16_p2) target bundleno = 5 (0x5), region = 98 }
 0x186   :  { %367 = vsyncpa [#allocation6], 1 }
 0x187   :  { %369 = vsyncpa [#allocation6 + $0x1], 1 }
 0x188   :  { %370 = vsyncpa [#allocation7], 1 }
 0x189   :  { %372 = vsyncpa [#allocation7 + $0x1], 1 }
 0x18a   :  { %373 = vsyncpa [#allocation10], 1 }

</bundles_post_ra>
